<compile_context>
chip_gen: v7x
topology: tpu7x:2x2x1
jax: 0.10.0
libtpu: 0.0.40
codegen_flags: <defaults>
</compile_context>

<pallas_src>
import math
import jax
import jax.numpy as jnp
from jax import lax
from jax.experimental import pallas as pl
from jax.experimental.pallas import tpu as pltpu


# --------------------------------------------------------------------------- #
# Kernel
# --------------------------------------------------------------------------- #
def _noisy_linear_kernel(x_ref, wmu_ref, wsig_ref, ein_ref, eout_ref, beff_ref,
                         o_ref, acc_mu_ref, acc_sig_ref):
    k = pl.program_id(2)

    @pl.when(k == 0)
    def _():
        acc_mu_ref[...] = jnp.zeros_like(acc_mu_ref)
        acc_sig_ref[...] = jnp.zeros_like(acc_sig_ref)

    wdt = wmu_ref.dtype
    x = x_ref[...]                         # (tm, tk) f32
    xe = x * ein_ref[...]                  # f32 elementwise (v5e-safe), overlaps MXU

    # Contract last dims of both operands -> x @ W.T with no in-kernel transpose.
    dn = (((1,), (1,)), ((), ()))
    acc_mu_ref[...] += lax.dot_general(x.astype(wdt), wmu_ref[...], dn,
                                       preferred_element_type=jnp.float32)
    acc_sig_ref[...] += lax.dot_general(xe.astype(wdt), wsig_ref[...], dn,
                                        preferred_element_type=jnp.float32)

    @pl.when(k == pl.num_programs(2) - 1)
    def _():
        # eps_out scale distributes over the K sum; apply once here, plus bias.
        o_ref[...] = (acc_mu_ref[...]
                      + acc_sig_ref[...] * eout_ref[...]
                      + beff_ref[...]).astype(o_ref.dtype)


# --------------------------------------------------------------------------- #
# Wrapper
# --------------------------------------------------------------------------- #
def _round_up(a, m):
    return -(-a // m) * m


def _pad2(a, rows, cols):
    r, c = a.shape
    if r == rows and c == cols:
        return a
    return jnp.pad(a, ((0, rows - r), (0, cols - c)))


def _pick_tile(dim, cap, align):
    """Largest tile <= cap that is a multiple of `align` and divides the
    align-rounded dim exactly (=> padding is only up to `align`, never a whole
    extra tile, and for power-of-two dims it is a no-op)."""
    d = _round_up(dim, align)
    t = min(d, cap)
    while d % t != 0:
        t -= align
    return t


def noisy_linear(x, weight_mu, weight_sigma, bias_mu, bias_sigma,
                 eps_in, eps_out, *, weight_dtype=jnp.bfloat16,
                 tm=None, tn=None, tk=None,
                 vmem_limit_bytes=40 * 1024 * 1024):
    """NoisyLinear forward.

    x: (B, in_f); weight_mu/weight_sigma: (out_f, in_f) (PyTorch layout);
    bias_mu/bias_sigma: (out_f,); eps_in: (in_f,); eps_out: (out_f,)
    (factorized noise exactly as produced by reset_noise(); the module's
    weight_epsilon == outer(eps_out, eps_in), bias_epsilon == eps_out).
    """
    B, in_f = x.shape
    out_f, in_f2 = weight_mu.shape
    assert in_f == in_f2

    # O(out_f) bias combine: once, in plain JAX, kept f32.
    b_eff = (bias_mu + bias_sigma * eps_out).reshape(1, out_f).astype(jnp.float32)

    # ---- tile selection ---------------------------------------------------- #
    # tm tracks the batch (x is the small operand) so the M grid collapses to 1
    # for typical batches and the two weight matrices stream from HBM once.
    tm = tm or _pick_tile(B, 512, 8)
    tk = tk or _pick_tile(in_f, 2048, 128)

    m_blocks = _round_up(B, 8) // tm
    tn_cap = 512
    if tn is None and m_blocks == 1:
        # Keep >=2 parallel grid iterations so both v7x TensorCores get work.
        n128 = _round_up(out_f, 128) // 128
        if n128 >= 2:
            tn_cap = min(tn_cap, (n128 // 2) * 128)
    tn = tn or _pick_tile(out_f, tn_cap, 128)

    Mp, Np, Kp = _round_up(B, tm), _round_up(out_f, tn), _round_up(in_f, tk)

    # ---- operand prep (bf16 weights halve the dominant HBM traffic) -------- #
    wmu = _pad2(weight_mu.astype(weight_dtype), Np, Kp)
    wsig = _pad2(weight_sigma.astype(weight_dtype), Np, Kp)
    xp = _pad2(x, Mp, Kp)
    ein = _pad2(eps_in.reshape(1, in_f).astype(jnp.float32), 1, Kp)
    eout = _pad2(eps_out.reshape(1, out_f).astype(jnp.float32), 1, Np)
    beff = _pad2(b_eff, 1, Np)

    grid = (Mp // tm, Np // tn, Kp // tk)

    wbytes = jnp.dtype(weight_dtype).itemsize
    cost = pl.CostEstimate(
        flops=4 * B * out_f * in_f,          # two matmuls
        transcendentals=0,
        bytes_accessed=(2 * out_f * in_f * wbytes
                        + B * in_f * x.dtype.itemsize
                        + B * out_f * x.dtype.itemsize))

    out = pl.pallas_call(
        _noisy_linear_kernel,
        out_shape=jax.ShapeDtypeStruct((Mp, Np), x.dtype),
        grid_spec=pltpu.PrefetchScalarGridSpec(
            num_scalar_prefetch=0,
            grid=grid,
            in_specs=[
                pl.BlockSpec((tm, tk), lambda i, j, k: (i, k)),   # x
                pl.BlockSpec((tn, tk), lambda i, j, k: (j, k)),   # weight_mu
                pl.BlockSpec((tn, tk), lambda i, j, k: (j, k)),   # weight_sigma
                pl.BlockSpec((1, tk),  lambda i, j, k: (0, k)),   # eps_in  row
                pl.BlockSpec((1, tn),  lambda i, j, k: (0, j)),   # eps_out row
                pl.BlockSpec((1, tn),  lambda i, j, k: (0, j)),   # b_eff   row
            ],
            out_specs=pl.BlockSpec((tm, tn), lambda i, j, k: (i, j)),
            scratch_shapes=[pltpu.VMEM((tm, tn), jnp.float32),    # acc_mu
                            pltpu.VMEM((tm, tn), jnp.float32)],   # acc_sig
        ),
        compiler_params=pltpu.CompilerParams(
            dimension_semantics=("parallel", "parallel", "arbitrary"),
            vmem_limit_bytes=vmem_limit_bytes),
        cost_estimate=cost,
    )(xp, wmu, wsig, ein, eout, beff)

    return out[:B, :out_f]


# --------------------------------------------------------------------------- #
# Host-side init / reference (plain JAX, matches the PyTorch module)
# --------------------------------------------------------------------------- #
def scale_noise(key, size):
    """Factorized gaussian noise: sign(x) * sqrt(|x|), x ~ N(0, 1)."""
    x = jax.random.normal(key, (size,), dtype=jnp.float32)
    return jnp.sign(x) * jnp.sqrt(jnp.abs(x))


def init_noisy_linear(key, in_features, out_features, std_init=0.5):
    k_wmu, k_bmu, k_eps_in, k_eps_out = jax.random.split(key, 4)
    mu_range = 1.0 / math.sqrt(in_features)

    weight_mu = jax.random.uniform(
        k_wmu, (out_features, in_features), jnp.float32,
        minval=-mu_range, maxval=mu_range)
    weight_sigma = jnp.full((out_features, in_features),
                            std_init / math.sqrt(in_features), jnp.float32)
    bias_mu = jax.random.uniform(
        k_bmu, (out_features,), jnp.float32, minval=-mu_range, maxval=mu_range)
    bias_sigma = jnp.full((out_features,),
                          std_init / math.sqrt(out_features), jnp.float32)

    eps_in = scale_noise(k_eps_in, in_features)
    eps_out = scale_noise(k_eps_out, out_features)

    return dict(weight_mu=weight_mu, weight_sigma=weight_sigma,
                bias_mu=bias_mu, bias_sigma=bias_sigma,
                eps_in=eps_in, eps_out=eps_out)


def noisy_linear_ref(x, p):
    """Pure-JAX f32 reference: materializes weight_epsilon exactly like PyTorch."""
    weight_epsilon = jnp.outer(p["eps_out"], p["eps_in"])   # eps_out.ger(eps_in)
    bias_epsilon = p["eps_out"]
    w = p["weight_mu"] + p["weight_sigma"] * weight_epsilon
    b = p["bias_mu"] + p["bias_sigma"] * bias_epsilon
    return x @ w.T + b


if __name__ == "__main__":
    key = jax.random.PRNGKey(0)

    # --- small demo shapes (module-typical head), f32 path, tight check ----- #
    k_params, k_x, key = jax.random.split(key, 3)
    batch, in_features, out_features = 2, 32, 64
    params = init_noisy_linear(k_params, in_features, out_features)
    x = jax.random.normal(k_x, (batch, in_features), dtype=jnp.float32)

    out = noisy_linear(x, params["weight_mu"], params["weight_sigma"],
                       params["bias_mu"], params["bias_sigma"],
                       params["eps_in"], params["eps_out"],
                       weight_dtype=jnp.float32)
    out = jax.block_until_ready(out)
    ref = noisy_linear_ref(x, params)
    assert out.shape == (batch, out_features)
    assert jnp.allclose(out, ref, atol=1e-4, rtol=1e-4), "mismatch (small, f32)"

    # --- larger shapes: exercise M/N/K grid + K accumulator, bf16 weights --- #
    k_params2, k_x2 = jax.random.split(key)
    batch2, in2, out2 = 48, 2304, 640       # grid = (1, N>=2, K=2) with defaults
    params2 = init_noisy_linear(k_params2, in2, out2)
    x2 = jax.random.normal(k_x2, (batch2, in2), dtype=jnp.float32)

    out2_v = noisy_linear(x2, params2["weight_mu"], params2["weight_sigma"],
                          params2["bias_mu"], params2["bias_sigma"],
                          params2["eps_in"], params2["eps_out"])   # bf16 weights
    out2_v = jax.block_until_ready(out2_v)
    ref2 = noisy_linear_ref(x2, params2)
    assert out2_v.shape == (batch2, out2)
    # bf16 weight quantization -> ~0.4% relative error budget.
    assert jnp.allclose(out2_v, ref2, atol=3e-2, rtol=3e-2), "mismatch (tiled, bf16)"

    print("KERNEL_OK")
</pallas_src>

<mosaic_0001>
module attributes {stable_mosaic.version = 11 : i64} {
  func.func @_noisy_linear_kernel(%arg0: i32, %arg1: i32, %arg2: i32, %arg3: memref<8x128xf32, #tpu.memory_space<vmem>>, %arg4: memref<128x128xf32, #tpu.memory_space<vmem>>, %arg5: memref<128x128xf32, #tpu.memory_space<vmem>>, %arg6: memref<1x128xf32, #tpu.memory_space<vmem>>, %arg7: memref<1x128xf32, #tpu.memory_space<vmem>>, %arg8: memref<1x128xf32, #tpu.memory_space<vmem>>, %arg9: memref<8x128xf32, #tpu.memory_space<vmem>>, %arg10: memref<8x128xf32, #tpu.memory_space<vmem>>, %arg11: memref<8x128xf32, #tpu.memory_space<vmem>>) attributes {dimension_semantics = [#tpu.dimension_semantics<parallel>, #tpu.dimension_semantics<parallel>, #tpu.dimension_semantics<arbitrary>], iteration_bounds = array<i64: 1, 1, 1>, scalar_prefetch = 0 : i64, scratch_operands = 2 : i64, tpu.core_type = #tpu.core_type<tc>, window_params = [{transform_indices = @transform_0, window_bounds = array<i64: 8, 128>}, {transform_indices = @transform_1, window_bounds = array<i64: 128, 128>}, {transform_indices = @transform_2, window_bounds = array<i64: 128, 128>}, {transform_indices = @transform_3, window_bounds = array<i64: 1, 128>}, {transform_indices = @transform_4, window_bounds = array<i64: 1, 128>}, {transform_indices = @transform_5, window_bounds = array<i64: 1, 128>}, {transform_indices = @transform_6, window_bounds = array<i64: 8, 128>}]} {
    %c0_i32 = arith.constant 0 : i32
    %0 = arith.cmpi eq, %arg2, %c0_i32 : i32
    %1 = arith.extui %0 : i1 to i32
    %c0_i32_0 = arith.constant 0 : i32
    %2 = arith.cmpi ne, %1, %c0_i32_0 : i32
    scf.if %2 {
      %cst_19 = arith.constant 0.000000e+00 : f32
      %20 = vector.broadcast %cst_19 : f32 to vector<8x128xf32>
      %c0_20 = arith.constant 0 : index
      %c0_21 = arith.constant 0 : index
      %21 = vector.load %arg10[%c0_20, %c0_21] : memref<8x128xf32, #tpu.memory_space<vmem>>, vector<8x128xf32>
      tpu.vector_store %arg10[%c0_20, %c0_21], %20 {strides = array<i32>} : memref<8x128xf32, #tpu.memory_space<vmem>>, vector<8x128xf32>,
      %cst_22 = arith.constant 0.000000e+00 : f32
      %22 = vector.broadcast %cst_22 : f32 to vector<8x128xf32>
      %c0_23 = arith.constant 0 : index
      %c0_24 = arith.constant 0 : index
      %23 = vector.load %arg11[%c0_23, %c0_24] : memref<8x128xf32, #tpu.memory_space<vmem>>, vector<8x128xf32>
      tpu.vector_store %arg11[%c0_23, %c0_24], %22 {strides = array<i32>} : memref<8x128xf32, #tpu.memory_space<vmem>>, vector<8x128xf32>,
    } else {
    }
    %c0 = arith.constant 0 : index
    %c0_1 = arith.constant 0 : index
    %3 = vector.load %arg3[%c0, %c0_1] : memref<8x128xf32, #tpu.memory_space<vmem>>, vector<8x128xf32>
    %c0_2 = arith.constant 0 : index
    %c0_3 = arith.constant 0 : index
    %4 = vector.load %arg6[%c0_2, %c0_3] : memref<1x128xf32, #tpu.memory_space<vmem>>, vector<1x128xf32>
    %5 = vector.broadcast %4 : vector<1x128xf32> to vector<8x128xf32>
    %6 = arith.mulf %3, %5 : vector<8x128xf32>
    %c0_4 = arith.constant 0 : index
    %c0_5 = arith.constant 0 : index
    %7 = vector.load %arg10[%c0_4, %c0_5] : memref<8x128xf32, #tpu.memory_space<vmem>>, vector<8x128xf32>
    %c0_6 = arith.constant 0 : index
    %c0_7 = arith.constant 0 : index
    %8 = vector.load %arg4[%c0_6, %c0_7] : memref<128x128xf32, #tpu.memory_space<vmem>>, vector<128x128xf32>
    %cst = arith.constant dense<0.000000e+00> : vector<8x128xf32>
    %9 = tpu.matmul %3, %8, %cst {dimension_numbers = #tpu.dot_dimension_numbers<[1], [1], [0], [0], [0, 0, 1, 0], [], []>} : vector<8x128xf32>, vector<128x128xf32>, vector<8x128xf32> -> vector<8x128xf32>
    %10 = arith.addf %7, %9 : vector<8x128xf32>
    %c0_8 = arith.constant 0 : index
    %c0_9 = arith.constant 0 : index
    %11 = vector.load %arg10[%c0_8, %c0_9] : memref<8x128xf32, #tpu.memory_space<vmem>>, vector<8x128xf32>
    tpu.vector_store %arg10[%c0_8, %c0_9], %10 {strides = array<i32>} : memref<8x128xf32, #tpu.memory_space<vmem>>, vector<8x128xf32>,
    %c0_10 = arith.constant 0 : index
    %c0_11 = arith.constant 0 : index
    %12 = vector.load %arg11[%c0_10, %c0_11] : memref<8x128xf32, #tpu.memory_space<vmem>>, vector<8x128xf32>
    %c0_12 = arith.constant 0 : index
    %c0_13 = arith.constant 0 : index
    %13 = vector.load %arg5[%c0_12, %c0_13] : memref<128x128xf32, #tpu.memory_space<vmem>>, vector<128x128xf32>
    %cst_14 = arith.constant dense<0.000000e+00> : vector<8x128xf32>
    %14 = tpu.matmul %6, %13, %cst_14 {dimension_numbers = #tpu.dot_dimension_numbers<[1], [1], [0], [0], [0, 0, 1, 0], [], []>} : vector<8x128xf32>, vector<128x128xf32>, vector<8x128xf32> -> vector<8x128xf32>
    %15 = arith.addf %12, %14 : vector<8x128xf32>
    %c0_15 = arith.constant 0 : index
    %c0_16 = arith.constant 0 : index
    %16 = vector.load %arg11[%c0_15, %c0_16] : memref<8x128xf32, #tpu.memory_space<vmem>>, vector<8x128xf32>
    tpu.vector_store %arg11[%c0_15, %c0_16], %15 {strides = array<i32>} : memref<8x128xf32, #tpu.memory_space<vmem>>, vector<8x128xf32>,
    %c0_i32_17 = arith.constant 0 : i32
    %17 = arith.cmpi eq, %arg2, %c0_i32_17 : i32
    %18 = arith.extui %17 : i1 to i32
    %c0_i32_18 = arith.constant 0 : i32
    %19 = arith.cmpi ne, %18, %c0_i32_18 : i32
    scf.if %19 {
      %c0_19 = arith.constant 0 : index
      %c0_20 = arith.constant 0 : index
      %20 = vector.load %arg10[%c0_19, %c0_20] : memref<8x128xf32, #tpu.memory_space<vmem>>, vector<8x128xf32>
      %c0_21 = arith.constant 0 : index
      %c0_22 = arith.constant 0 : index
      %21 = vector.load %arg11[%c0_21, %c0_22] : memref<8x128xf32, #tpu.memory_space<vmem>>, vector<8x128xf32>
      %c0_23 = arith.constant 0 : index
      %c0_24 = arith.constant 0 : index
      %22 = vector.load %arg7[%c0_23, %c0_24] : memref<1x128xf32, #tpu.memory_space<vmem>>, vector<1x128xf32>
      %23 = vector.broadcast %22 : vector<1x128xf32> to vector<8x128xf32>
      %24 = arith.mulf %21, %23 : vector<8x128xf32>
      %25 = arith.addf %20, %24 : vector<8x128xf32>
      %c0_25 = arith.constant 0 : index
      %c0_26 = arith.constant 0 : index
      %26 = vector.load %arg8[%c0_25, %c0_26] : memref<1x128xf32, #tpu.memory_space<vmem>>, vector<1x128xf32>
      %27 = vector.broadcast %26 : vector<1x128xf32> to vector<8x128xf32>
      %28 = arith.addf %25, %27 : vector<8x128xf32>
      %c0_27 = arith.constant 0 : index
      %c0_28 = arith.constant 0 : index
      %29 = vector.load %arg9[%c0_27, %c0_28] : memref<8x128xf32, #tpu.memory_space<vmem>>, vector<8x128xf32>
      tpu.vector_store %arg9[%c0_27, %c0_28], %28 {strides = array<i32>} : memref<8x128xf32, #tpu.memory_space<vmem>>, vector<8x128xf32>,
    } else {
    }
    return
  }
  func.func @transform_0(%arg0: i32, %arg1: i32, %arg2: i32) -> (i32, i32) {
    %c0_i32 = arith.constant 0 : i32
    return %arg0, %arg2 : i32, i32
  }
  func.func @transform_1(%arg0: i32, %arg1: i32, %arg2: i32) -> (i32, i32) {
    %c0_i32 = arith.constant 0 : i32
    return %arg1, %arg2 : i32, i32
  }
  func.func @transform_2(%arg0: i32, %arg1: i32, %arg2: i32) -> (i32, i32) {
    %c0_i32 = arith.constant 0 : i32
    return %arg1, %arg2 : i32, i32
  }
  func.func @transform_3(%arg0: i32, %arg1: i32, %arg2: i32) -> (i32, i32) {
    %c0_i32 = arith.constant 0 : i32
    %c0_i32_0 = arith.constant 0 : i32
    return %c0_i32, %arg2 : i32, i32
  }
  func.func @transform_4(%arg0: i32, %arg1: i32, %arg2: i32) -> (i32, i32) {
    %c0_i32 = arith.constant 0 : i32
    %c0_i32_0 = arith.constant 0 : i32
    return %c0_i32, %arg1 : i32, i32
  }
  func.func @transform_5(%arg0: i32, %arg1: i32, %arg2: i32) -> (i32, i32) {
    %c0_i32 = arith.constant 0 : i32
    %c0_i32_0 = arith.constant 0 : i32
    return %c0_i32, %arg1 : i32, i32
  }
  func.func @transform_6(%arg0: i32, %arg1: i32, %arg2: i32) -> (i32, i32) {
    %c0_i32 = arith.constant 0 : i32
    return %arg0, %arg1 : i32, i32
  }
}

</mosaic_0001>

<bundles_post_ra>
// kernel: tpu_custom_call.1
= control target key start
LH: loop header
LB: loop body
LE: loop exit
PB: predicated region body
PF: predicated region fallthrough
CT: control target
= control target key end

     0   :  { %11 = vsyncpa [#allocation5], 0  ;;  %s676_s0 = inlined_call_operand.hbm [shape: f32[8,128], index: 0, kind: input, shape index: {}]   ;;  %s677_s1 = inlined_call_operand.hbm [shape: f32[128,128], index: 1, kind: input, shape index: {}]   ;;  %s678_s2 = inlined_call_operand.hbm [shape: f32[128,128], index: 2, kind: input, shape index: {}]   ;;  %s679_s3 = inlined_call_operand.vmem [shape: f32[1,128], index: 3, kind: input, shape index: {}]   ;;  %s680_s4 = inlined_call_operand.vmem [shape: f32[1,128], index: 4, kind: input, shape index: {}]   ;;  %s681_s5 = inlined_call_operand.vmem [shape: f32[1,128], index: 5, kind: input, shape index: {}]   ;;  %s682_s6 = inlined_call_operand.hbm [shape: f32[8,128], index: 6, kind: output, shape index: {}]  }
   0x1   :  { %12 = vsyncpa [#allocation8], 0 }
   0x2   :  { %13 = vsyncpa [#allocation6], 0  ;;  %s553_s21 = smov [#allocation7]   ;;  %s459_s25 = scalar_lea.hbm %s677_s1, 2048 }
   0x3   :  { %s29_s22 = sshll.u32 %s553_s21, 4  ;;  %p460_p0 = scmp.ne.s32.totalorder %s677_s1, %s459_s25  ;;  %s30_s22 = int_to_ptr.vmem [resolvable:$true] %s29_s22 }
   0x4   :  { %p463_p1 = scmp.lt.u32.totalorder %s459_s25, %s677_s1 }
   0x6   :  { %p465_p2 = pnand %p463_p1, %p460_p0 }
   0x8   :  { %468 = shalt.err (!%p465_p2)
}
   0x9   :  { %s469_s30 = scalar_lea.vmem %s30_s22, 2048  ;;  %p474_p4 = scmp.lt.s32.totalorder %s30_s22, %s30_s22 }
   0xa   :  { %p470_p3 = scmp.ne.s32.totalorder %s30_s22, %s469_s30  ;;  %p475_p5 = scmp.lt.s32.totalorder %s469_s30, %s469_s30 }
   0xc   :  { %p476_p6 = por %p475_p5, %p474_p4 }
   0xe   :  { %p477_p7 = pnand %p476_p6, %p470_p3 }
  0x10   :  { %480 = shalt.err (!%p477_p7)
}
  0x11   :  { %s554_s7 = smov 128   ;;  %s555_s8 = smov 8  }
  0x12   :  { %35 = dma.hbm_to_vmem [thread:$0]  %s677_s1, 2048, %s30_s22, [#allocation8], %s554_s7, %s554_s7, %s555_s8  }
  0x13   :  { %s556_s11 = smov [#allocation4]   ;;  %s557_s13 = smov [#allocation9]  }
  0x14   :  { %s20_s12 = sshll.u32 %s556_s11, 4  ;;  %s41_s14 = sshll.u32 %s557_s13, 4  ;;  %s21_s12 = int_to_ptr.vmem [resolvable:$true] %s20_s12  ;;  %s42_s14 = int_to_ptr.vmem [resolvable:$true] %s41_s14 }
  0x15   :  { %s481_s17 = scalar_lea.hbm %s676_s0, 128 }
  0x16   :  { %p482_p8 = scmp.ne.s32.totalorder %s676_s0, %s481_s17  ;;  %p485_p9 = scmp.lt.u32.totalorder %s481_s17, %s676_s0 }
  0x18   :  { %p487_p10 = pnand %p485_p9, %p482_p8 }
  0x1a   :  { %490 = shalt.err (!%p487_p10)
}
  0x1b   :  { %s491_s1 = scalar_lea.vmem %s21_s12, 128  ;;  %p496_p12 = scmp.lt.s32.totalorder %s21_s12, %s21_s12 }
  0x1c   :  { %p492_p11 = scmp.ne.s32.totalorder %s21_s12, %s491_s1  ;;  %p497_p13 = scmp.lt.s32.totalorder %s491_s1, %s491_s1 }
  0x1e   :  { %p498_p0 = por %p497_p13, %p496_p12 }
  0x20   :  { %p499_p1 = pnand %p498_p0, %p492_p11 }
  0x22   :  { %502 = shalt.err (!%p499_p1)
}
  0x23   :  { %23 = dma.hbm_to_vmem [thread:$0]  %s676_s0, 128, %s21_s12, [#allocation5]  }
  0x24   :  { %s503_s26 = scalar_lea.hbm %s678_s2, 2048 }
  0x25   :  { %p504_p2 = scmp.ne.s32.totalorder %s678_s2, %s503_s26  ;;  %p507_p3 = scmp.lt.u32.totalorder %s503_s26, %s678_s2 }
  0x27   :  { %p509_p4 = pnand %p507_p3, %p504_p2 }
  0x29   :  { %512 = shalt.err (!%p509_p4)
}
  0x2a   :  { %s513_s9 = scalar_lea.vmem %s42_s14, 2048  ;;  %p518_p6 = scmp.lt.s32.totalorder %s42_s14, %s42_s14 }
  0x2b   :  { %p514_p5 = scmp.ne.s32.totalorder %s42_s14, %s513_s9  ;;  %p519_p7 = scmp.lt.s32.totalorder %s513_s9, %s513_s9 }
  0x2d   :  { %p520_p8 = por %p519_p7, %p518_p6 }
  0x2f   :  { %p521_p9 = pnand %p520_p8, %p514_p5 }
  0x31   :  { %524 = shalt.err (!%p521_p9)
}
  0x32   :  { %47 = dma.hbm_to_vmem [thread:$0]  %s678_s2, 2048, %s42_s14, [#allocation8], %s554_s7, %s554_s7, %s555_s8  }
  0x33   :  { %547 = dma.done.wait [#allocation5], 128  }
  0x34   :  { %548 = vsyncadd [#allocation5], 4294967168 }
  0x35   :  { %549 = dma.done.wait [#allocation8], 4096  }
  0x36   :  { %550 = vsyncadd [#allocation8], 4294963200  ;;  %v558_v0 = vmov 0.0|0.0   ;;  %vm559_vm0 = vmmov 0   ;;  %v560_v1 = vmov 0.0   ;;  %v168_v2 = vld [vmem:[#allocation9] sm:$0xff] }
  0x37   :  { %426 = vmatprep.subr.bf16.mxu1 %v558_v0  ;;  %402 = vmatprep.subr.bf16.mxu0 %v558_v0  ;;  %v169_v3 = vld [vmem:[#allocation9 + $0x8] sm:$0xff]  ;;  %v79_v4 = vld [vmem:[#allocation7] sm:$0xff]  ;;  %v170_v8 = vld [vmem:[#allocation9 + $0x10] sm:$0xff]  ;;  %s561_s14 = smov [#allocation10]  }
  0x38   :  { %399 = vmatprep.mubr.msk.f32.mxu1 %vm559_vm0, %v560_v1  ;;  %364 = vmatprep.mubr.msk.f32.mxu0 %vm559_vm0, %v560_v1  ;;  %v427_v5 = vpack.c.bf16 %v169_v3, %v168_v2  ;;  %v80_v6 = vld [vmem:[#allocation7 + $0x8] sm:$0xff]  ;;  %v171_v9 = vld [vmem:[#allocation9 + $0x18] sm:$0xff]  ;;  %v81_v10 = vld [vmem:[#allocation7 + $0x10] sm:$0xff]  ;;  %s285_s15 = sshll.u32 %s561_s14, 4  ;;  %s286_s15 = int_to_ptr.vmem [resolvable:$true] %s285_s15 }
  0x39   :  { %v403_v7 = vpack.c.bf16 %v80_v6, %v79_v4  ;;  %v82_v11 = vld [vmem:[#allocation7 + $0x18] sm:$0xff]  ;;  %v430_v12 = vpack.c.bf16 %v171_v9, %v170_v8  ;;  %v172_v14 = vld [vmem:[#allocation9 + $0x20] sm:$0xff]  ;;  %v173_v15 = vld [vmem:[#allocation9 + $0x28] sm:$0xff]  ;;  %p530_p11 = scmp.lt.s32.totalorder %s286_s15, %s286_s15 }
  0x3a   :  { %428 = vmatpush3.bf16.xpose.msra.mxu1 %v427_v5  ;;  %v406_v13 = vpack.c.bf16 %v82_v11, %v81_v10  ;;  %v83_v16 = vld [vmem:[#allocation7 + $0x20] sm:$0xff]  ;;  %v84_v17 = vld [vmem:[#allocation7 + $0x28] sm:$0xff]  ;;  %v433_v18 = vpack.c.bf16 %v173_v15, %v172_v14  ;;  %v174_v20 = vld [vmem:[#allocation9 + $0x30] sm:$0xff] }
  0x3b   :  { %404 = vmatpush3.bf16.xpose.msra.mxu0 %v403_v7  ;;  %429 = vmatprep.subr.bf16.mxu1 %v558_v0  ;;  %v409_v19 = vpack.c.bf16 %v84_v17, %v83_v16  ;;  %v175_v21 = vld [vmem:[#allocation9 + $0x38] sm:$0xff]  ;;  %v85_v22 = vld [vmem:[#allocation7 + $0x30] sm:$0xff]  ;;  %v176_v26 = vld [vmem:[#allocation9 + $0x40] sm:$0xff] }
  0x3c   :  { %405 = vmatprep.subr.bf16.mxu0 %v558_v0  ;;  %v86_v23 = vld [vmem:[#allocation7 + $0x38] sm:$0xff]  ;;  %v436_v24 = vpack.c.bf16 %v175_v21, %v174_v20  ;;  %v177_v27 = vld [vmem:[#allocation9 + $0x48] sm:$0xff]  ;;  %v87_v28 = vld [vmem:[#allocation7 + $0x40] sm:$0xff] }
  0x3d   :  { %v412_v25 = vpack.c.bf16 %v86_v23, %v85_v22  ;;  %v88_v29 = vld [vmem:[#allocation7 + $0x48] sm:$0xff]  ;;  %v439_v30 = vpack.c.bf16 %v177_v27, %v176_v26  ;;  %v178_v32 = vld [vmem:[#allocation9 + $0x50] sm:$0xff]  ;;  %v179_v33 = vld [vmem:[#allocation9 + $0x58] sm:$0xff] }
  0x3e   :  { %v415_v31 = vpack.c.bf16 %v88_v29, %v87_v28  ;;  %v89_v34 = vld [vmem:[#allocation7 + $0x50] sm:$0xff]  ;;  %v90_v35 = vld [vmem:[#allocation7 + $0x58] sm:$0xff]  ;;  %v442_v36 = vpack.c.bf16 %v179_v33, %v178_v32  ;;  %v180_v38 = vld [vmem:[#allocation9 + $0x60] sm:$0xff] }
  0x3f   :  { %v418_v37 = vpack.c.bf16 %v90_v35, %v89_v34  ;;  %v181_v39 = vld [vmem:[#allocation9 + $0x68] sm:$0xff]  ;;  %v91_v40 = vld [vmem:[#allocation7 + $0x60] sm:$0xff]  ;;  %v182_v44 = vld [vmem:[#allocation9 + $0x70] sm:$0xff] }
  0x40   :  { %v92_v41 = vld [vmem:[#allocation7 + $0x68] sm:$0xff]  ;;  %v445_v42 = vpack.c.bf16 %v181_v39, %v180_v38  ;;  %v183_v45 = vld [vmem:[#allocation9 + $0x78] sm:$0xff]  ;;  %v93_v46 = vld [vmem:[#allocation7 + $0x70] sm:$0xff] }
  0x41   :  { %v421_v43 = vpack.c.bf16 %v92_v41, %v91_v40  ;;  %v94_v47 = vld [vmem:[#allocation7 + $0x78] sm:$0xff]  ;;  %v448_v48 = vpack.c.bf16 %v183_v45, %v182_v44 }
  0x42   :  { %431 = vmatpush3.bf16.xpose.msra.mxu1 %v430_v12  ;;  %v424_v49 = vpack.c.bf16 %v94_v47, %v93_v46  ;;  %v69_v50 = vld [vmem:[#allocation4] sm:$0xff] }
  0x43   :  { %407 = vmatpush3.bf16.xpose.msra.mxu0 %v406_v13  ;;  %432 = vmatprep.subr.bf16.mxu1 %v558_v0  ;;  %v295_v51 = vld [vmem:[%s679_s3] ss:$0 sm:$0xff]  ;;  %s525_s3 = scalar_lea.vmem %s286_s15, 128 }
  0x44   :  { %408 = vmatprep.subr.bf16.mxu0 %v558_v0  ;;  %v77_v52 = vmul.f32 %v295_v51, %v69_v50  ;;  %v296_v53 = vld [vmem:[%s680_s4] ss:$0 sm:$0xff]  ;;  %p526_p10 = scmp.ne.s32.totalorder %s286_s15, %s525_s3  ;;  %p531_p12 = scmp.lt.s32.totalorder %s525_s3, %s525_s3 }
  0x45   :  { %v297_v58 = vld [vmem:[%s681_s5] ss:$0 sm:$0xff] }
  0x46   :  { %p532_p13 = por %p531_p12, %p530_p11 }
  0x48   :  { %p533_p0 = pnand %p532_p13, %p526_p10 }
  0x4a   :  { %434 = vmatpush3.bf16.xpose.msra.mxu1 %v433_v18 }
  0x4b   :  { %410 = vmatpush3.bf16.xpose.msra.mxu0 %v409_v19  ;;  %435 = vmatprep.subr.bf16.mxu1 %v558_v0 }
  0x4c   :  { %411 = vmatprep.subr.bf16.mxu0 %v558_v0 }
  0x52   :  { %437 = vmatpush3.bf16.xpose.msra.mxu1 %v436_v24 }
  0x53   :  { %413 = vmatpush3.bf16.xpose.msra.mxu0 %v412_v25  ;;  %438 = vmatprep.subr.bf16.mxu1 %v558_v0 }
  0x54   :  { %414 = vmatprep.subr.bf16.mxu0 %v558_v0 }
  0x5a   :  { %440 = vmatpush3.bf16.xpose.msra.mxu1 %v439_v30 }
  0x5b   :  { %416 = vmatpush3.bf16.xpose.msra.mxu0 %v415_v31  ;;  %441 = vmatprep.subr.bf16.mxu1 %v558_v0 }
  0x5c   :  { %417 = vmatprep.subr.bf16.mxu0 %v558_v0 }
  0x62   :  { %443 = vmatpush3.bf16.xpose.msra.mxu1 %v442_v36 }
  0x63   :  { %419 = vmatpush3.bf16.xpose.msra.mxu0 %v418_v37  ;;  %444 = vmatprep.subr.bf16.mxu1 %v558_v0 }
  0x64   :  { %420 = vmatprep.subr.bf16.mxu0 %v558_v0 }
  0x6a   :  { %446 = vmatpush3.bf16.xpose.msra.mxu1 %v445_v42 }
  0x6b   :  { %422 = vmatpush3.bf16.xpose.msra.mxu0 %v421_v43  ;;  %447 = vmatprep.subr.bf16.mxu1 %v558_v0 }
  0x6c   :  { %423 = vmatprep.subr.bf16.mxu0 %v558_v0 }
  0x72   :  { %449 = vmatpush3.bf16.xpose.msra.mxu1 %v448_v48 }
  0x73   :  { %425 = vmatpush3.bf16.xpose.msra.mxu0 %v424_v49 }
  0x79   :  { %400 = vmatmul.mubr.f32.vlgmr.msra.gmra.mrb[0].mxu1 %v77_v52 }
  0x7a   :  { %365 = vmatmul.mubr.f32.vlgmr.msra.gmra.mrb[0].mxu0 %v69_v50 }
 0x14c   :  { %v250_v54 = vpop.f32.mrb[0].mxu1 }
 0x14d   :  { %v268_v55 = vmul.f32 %v296_v53, %v250_v54  ;;  %v161_v56 = vpop.f32.mrb[0].mxu0  ;;  %v401_v57 = vpop.f32.mrb[1].mxu1 }
 0x14e   :  { %v366_v59 = vpop.f32.mrb[1].mxu0 }
 0x14f   :  { %v269_v60 = vadd.f32 %v268_v55, %v161_v56 }
 0x151   :  { %v277_v61 = vadd.f32 %v297_v58, %v269_v60 }
 0x153   :  { %278 = vst [vmem:[#allocation10] sm:$0xff] %v277_v61 }
 0x154   :  { %536 = shalt.err (!%p533_p0)
}
 0x155   :  { %s537_s17 = scalar_lea.hbm %s682_s6, 128 }
 0x156   :  { %p538_p1 = scmp.ne.s32.totalorder %s682_s6, %s537_s17  ;;  %p541_p2 = scmp.lt.u32.totalorder %s537_s17, %s682_s6 }
 0x158   :  { %p543_p3 = pnand %p541_p2, %p538_p1 }
 0x15a   :  { %546 = shalt.err (!%p543_p3)
}
 0x15b   :  { %288 = dma.vmem_to_hbm [thread:$0]  %s286_s15, 128, %s682_s6, [#allocation6]  }
 0x15c   :  { %551 = dma.done.wait [#allocation6], 128  }
 0x15d   :  { %552 = vsyncadd [#allocation6], 4294967168 }
 0x15e   :  { %292 = vsyncpa [#allocation5], 1 }
 0x15f   :  { %293 = vsyncpa [#allocation8], 1 }
 0x160   :  { %294 = vsyncpa [#allocation6], 1 }

</bundles_post_ra>
